<compile_context>
chip_gen: v5e
topology: v5e:2x2
jax: 0.10.0
libtpu: 0.0.40
codegen_flags: <defaults>
</compile_context>

<pallas_src>
import functools

import jax
import jax.numpy as jnp
from jax.experimental import pallas as pl
from jax.experimental.pallas import tpu as pltpu


def _round_up(x, m):
    return ((x + m - 1) // m) * m


def _linear_kernel(x_ref, w_ref, b_ref, o_ref):
    """One (tm, tn) output tile; grid axis 2 (innermost) reduces over K.

    x_ref: (tm, tk) input dtype; w_ref: (tk, tn) bf16; b_ref: (1, tn) f32;
    o_ref: (tm, tn) f32 -- used directly as the resident accumulator (its
    block index does not depend on k, so it stays in VMEM across the
    reduction).
    NOTE: the init/accumulate logic relies on K being the LAST (innermost)
    grid axis; do not reorder the grid.
    """
    k = pl.program_id(2)

    # Seed the accumulator with the bias (saves a VPU add in the epilogue).
    @pl.when(k == 0)
    def _():
        o_ref[...] = jnp.broadcast_to(b_ref[...], o_ref.shape)

    # bf16 operands, f32 accumulation: native MXU path on all generations.
    o_ref[...] += jnp.dot(
        x_ref[...].astype(jnp.bfloat16),
        w_ref[...],
        preferred_element_type=jnp.float32,
    )


def prepare_params(weight, bias, *, tn_target=1024, tk_target=1024):
    """One-time parameter preprocessing (hoisted out of the forward path).

    weight: (N, K) f32  ->  (Kp, Np) bf16, padded to tile multiples, transposed.
    bias:   (N,)   f32  ->  (1, Np)  f32, zero-padded.
    """
    N, K = weight.shape
    Kp = _round_up(K, 128)
    tk = min(tk_target, Kp)
    while Kp % tk:          # pick tk as a divisor of Kp (terminates at 128)
        tk -= 128
    tn = min(tn_target, _round_up(N, 128))
    Np = _round_up(N, tn)

    w_kn = jnp.pad(weight, ((0, Np - N), (0, Kp - K))).T.astype(jnp.bfloat16)
    b_row = jnp.pad(bias.astype(jnp.float32), (0, Np - N)).reshape(1, Np)
    return (w_kn, b_row), {"N": N, "tn": tn, "tk": tk}


@functools.partial(jax.jit, static_argnames=("n_out", "tn", "tk", "tm_target"))
def column_parallel_linear_fwd(x, w_kn, b_row, *, n_out, tn, tk, tm_target=512):
    """Y = x @ W^T + b using the cached (Kp, Np) bf16 weight."""
    K = x.shape[-1]
    Kp, Np = w_kn.shape
    x2d = x.reshape(-1, K)
    M = x2d.shape[0]

    tm = min(tm_target, _round_up(M, 16))   # 16-row alignment for bf16 packing
    Mp = _round_up(M, tm)

    # Megacore (v7x has 2 TensorCores): if a sizeable problem collapsed to a
    # single (i, j) block, halve tn so the j axis gives each core a block.
    tn_eff = tn
    if (Mp // tm) * (Np // tn) == 1 and tn % 256 == 0 and Mp * Np * Kp >= (1 << 22):
        tn_eff = tn // 2

    # Pad x only when shapes are not already tile multiples (zero K-padding
    # contributes nothing to the dot; extra M rows are sliced off below).
    if (Mp, Kp) != (M, K):
        x2d = jnp.pad(x2d, ((0, Mp - M), (0, Kp - K)))

    grid = (Mp // tm, Np // tn_eff, Kp // tk)

    out = pl.pallas_call(
        _linear_kernel,
        out_shape=jax.ShapeDtypeStruct((Mp, Np), jnp.float32),
        grid_spec=pltpu.PrefetchScalarGridSpec(
            num_scalar_prefetch=0,
            grid=grid,
            in_specs=[
                pl.BlockSpec((tm, tk), lambda i, j, k: (i, k)),      # x tile
                pl.BlockSpec((tk, tn_eff), lambda i, j, k: (k, j)),  # W^T tile
                pl.BlockSpec((1, tn_eff), lambda i, j, k: (0, j)),   # bias tile
            ],
            out_specs=pl.BlockSpec((tm, tn_eff), lambda i, j, k: (i, j)),
        ),
        compiler_params=pltpu.CompilerParams(
            dimension_semantics=("parallel", "parallel", "arbitrary"),
            vmem_limit_bytes=48 * 1024 * 1024,
        ),
    )(x2d, w_kn, b_row)

    out = out[:M, :n_out]
    return out.reshape(*x.shape[:-1], n_out).astype(x.dtype)


class ColumnParallelLinear:
    """world_size == 1 ColumnParallelLinear: Y = X @ W^T + b.

    Weight ~ N(0, 0.02) (unscaled_init_method(0.02)), bias = 0,
    params_dtype = float32. The model-parallel copy/gather are identity at a
    single partition. Weight preprocessing is done once here; the per-call
    path only touches the activation.
    """

    def __init__(self, input_size, output_size, *, key, init_std=0.02,
                 tn_target=1024, tk_target=1024):
        self.input_size = input_size
        self.output_size = output_size
        self.weight = init_std * jax.random.normal(
            key, (output_size, input_size), dtype=jnp.float32)
        self.bias = jnp.zeros((output_size,), dtype=jnp.float32)
        (self.w_kn, self.b_row), self._meta = prepare_params(
            self.weight, self.bias, tn_target=tn_target, tk_target=tk_target)

    def __call__(self, x):
        return column_parallel_linear_fwd(
            x, self.w_kn, self.b_row,
            n_out=self._meta["N"], tn=self._meta["tn"], tk=self._meta["tk"])


if __name__ == "__main__":
    key = jax.random.PRNGKey(0)
    k1, k2, k3, k4 = jax.random.split(key, 4)

    # Case 1: small shapes consistent with the module (divisible dims),
    # no per-call activation padding.
    batch, seq, input_size, output_size = 2, 8, 128, 256
    layer = ColumnParallelLinear(input_size, output_size, key=k1)
    x = jax.random.normal(k2, (batch, seq, input_size), dtype=jnp.float32)
    y = layer(x)
    jax.block_until_ready(y)
    y_ref = x @ layer.weight.T + layer.bias
    assert y.shape == (batch, seq, output_size)
    # bf16 MXU operands (f32 accumulation) -> tolerances widened vs pure f32.
    assert jnp.allclose(y, y_ref, atol=2e-2, rtol=2e-2), float(
        jnp.max(jnp.abs(y - y_ref)))

    # Case 2: non-divisible shapes (exercises the padding / slicing path).
    layer2 = ColumnParallelLinear(96, 200, key=k3)
    x2 = jax.random.normal(k4, (2, 7, 96), dtype=jnp.float32)
    y2 = layer2(x2)
    jax.block_until_ready(y2)
    y2_ref = x2 @ layer2.weight.T + layer2.bias
    assert y2.shape == (2, 7, 200)
    assert jnp.allclose(y2, y2_ref, atol=2e-2, rtol=2e-2), float(
        jnp.max(jnp.abs(y2 - y2_ref)))

    # TODO(synk): model-parallel copy/gather collectives are identity at
    # world_size=1; a multi-device gather would use pltpu.make_async_remote_copy.
    print("KERNEL_OK")
</pallas_src>

<mosaic_0001>
module attributes {stable_mosaic.version = 11 : i64} {
  func.func @_linear_kernel(%arg0: i32, %arg1: i32, %arg2: i32, %arg3: memref<16x128xf32, #tpu.memory_space<vmem>>, %arg4: memref<128x256xbf16, #tpu.memory_space<vmem>>, %arg5: memref<1x256xf32, #tpu.memory_space<vmem>>, %arg6: memref<16x256xf32, #tpu.memory_space<vmem>>) attributes {dimension_semantics = [#tpu.dimension_semantics<parallel>, #tpu.dimension_semantics<parallel>, #tpu.dimension_semantics<arbitrary>], iteration_bounds = array<i64: 1, 1, 1>, scalar_prefetch = 0 : i64, scratch_operands = 0 : i64, tpu.core_type = #tpu.core_type<tc>, window_params = [{transform_indices = @transform_0, window_bounds = array<i64: 16, 128>}, {transform_indices = @transform_1, window_bounds = array<i64: 128, 256>}, {transform_indices = @transform_2, window_bounds = array<i64: 1, 256>}, {transform_indices = @transform_3, window_bounds = array<i64: 16, 256>}]} {
    %c0_i32 = arith.constant 0 : i32
    %0 = arith.cmpi eq, %arg2, %c0_i32 : i32
    %1 = arith.extui %0 : i1 to i32
    %c0_i32_0 = arith.constant 0 : i32
    %2 = arith.cmpi ne, %1, %c0_i32_0 : i32
    scf.if %2 {
      %c0_8 = arith.constant 0 : index
      %c0_9 = arith.constant 0 : index
      %10 = vector.load %arg5[%c0_8, %c0_9] : memref<1x256xf32, #tpu.memory_space<vmem>>, vector<1x256xf32>
      %11 = vector.shape_cast %10 : vector<1x256xf32> to vector<1x256xf32>
      %12 = vector.broadcast %11 : vector<1x256xf32> to vector<16x256xf32>
      %c0_10 = arith.constant 0 : index
      %c0_11 = arith.constant 0 : index
      %13 = vector.load %arg6[%c0_10, %c0_11] : memref<16x256xf32, #tpu.memory_space<vmem>>, vector<16x256xf32>
      tpu.vector_store %arg6[%c0_10, %c0_11], %12 {strides = array<i32>} : memref<16x256xf32, #tpu.memory_space<vmem>>, vector<16x256xf32>,
    } else {
    }
    %c0 = arith.constant 0 : index
    %c0_1 = arith.constant 0 : index
    %3 = vector.load %arg6[%c0, %c0_1] : memref<16x256xf32, #tpu.memory_space<vmem>>, vector<16x256xf32>
    %c0_2 = arith.constant 0 : index
    %c0_3 = arith.constant 0 : index
    %4 = vector.load %arg3[%c0_2, %c0_3] : memref<16x128xf32, #tpu.memory_space<vmem>>, vector<16x128xf32>
    %5 = arith.truncf %4 : vector<16x128xf32> to vector<16x128xbf16>
    %c0_4 = arith.constant 0 : index
    %c0_5 = arith.constant 0 : index
    %6 = vector.load %arg4[%c0_4, %c0_5] : memref<128x256xbf16, #tpu.memory_space<vmem>>, vector<128x256xbf16>
    %cst = arith.constant dense<0.000000e+00> : vector<16x256xf32>
    %7 = tpu.matmul %5, %6, %cst {dimension_numbers = #tpu.dot_dimension_numbers<[1], [0], [0], [1], [0, 0, 1, 1], [], []>} : vector<16x128xbf16>, vector<128x256xbf16>, vector<16x256xf32> -> vector<16x256xf32>
    %8 = arith.addf %3, %7 : vector<16x256xf32>
    %c0_6 = arith.constant 0 : index
    %c0_7 = arith.constant 0 : index
    %9 = vector.load %arg6[%c0_6, %c0_7] : memref<16x256xf32, #tpu.memory_space<vmem>>, vector<16x256xf32>
    tpu.vector_store %arg6[%c0_6, %c0_7], %8 {strides = array<i32>} : memref<16x256xf32, #tpu.memory_space<vmem>>, vector<16x256xf32>,
    return
  }
  func.func @transform_0(%arg0: i32, %arg1: i32, %arg2: i32) -> (i32, i32) {
    %c0_i32 = arith.constant 0 : i32
    return %arg0, %arg2 : i32, i32
  }
  func.func @transform_1(%arg0: i32, %arg1: i32, %arg2: i32) -> (i32, i32) {
    %c0_i32 = arith.constant 0 : i32
    return %arg2, %arg1 : i32, i32
  }
  func.func @transform_2(%arg0: i32, %arg1: i32, %arg2: i32) -> (i32, i32) {
    %c0_i32 = arith.constant 0 : i32
    %c0_i32_0 = arith.constant 0 : i32
    return %c0_i32, %arg1 : i32, i32
  }
  func.func @transform_3(%arg0: i32, %arg1: i32, %arg2: i32) -> (i32, i32) {
    %c0_i32 = arith.constant 0 : i32
    return %arg0, %arg1 : i32, i32
  }
}

</mosaic_0001>

<bundles_post_ra>
// kernel: column_parallel_linear_fwd.1
= control target key start
LH: loop header
LB: loop body
LE: loop exit
PB: predicated region body
PF: predicated region fallthrough
CT: control target
= control target key end

     0   :  { %8 = vsyncpa [#allocation3], 0  ;;  %s424_s0 = inlined_call_operand.hbm [shape: f32[16,128], index: 0, kind: input, shape index: {}]   ;;  %s425_s1 = inlined_call_operand.hbm [shape: bf16[128,256], index: 1, kind: input, shape index: {}]   ;;  %s426_s2 = inlined_call_operand.vmem [shape: f32[1,256], index: 2, kind: input, shape index: {}]   ;;  %s427_s3 = inlined_call_operand.hbm [shape: f32[16,256], index: 3, kind: output, shape index: {}]  }
   0x1   :  { %9 = vsyncpa [#allocation6], 0 }
   0x2   :  { %10 = vsyncpa [#allocation4], 0  ;;  %s15_s14 = sshll.u32 %s424_s0, 4  ;;  %s385_s15 = smov [#allocation2]   ;;  %s16_s14 = int_to_ptr.hbm [resolvable:$true] %s15_s14 }
   0x3   :  { %s17_s16 = sshll.u32 %s385_s15, 4  ;;  %s28_s19 = sshll.u32 %s425_s1, 4  ;;  %s18_s16 = int_to_ptr.vmem [resolvable:$true] %s17_s16  ;;  %s29_s19 = int_to_ptr.hbm [resolvable:$true] %s28_s19 }
   0x4   :  { %s386_s20 = smov 128   ;;  %s387_s21 = smov 8  }
   0x5   :  { %23 = dma.hbm_to_vmem [thread:$0]  %s16_s14, 256, %s18_s16, [#allocation3], %s386_s20, %s386_s20, %s387_s21  }
   0x6   :  { %s388_s22 = smov [#allocation5]  }
   0x7   :  { %s30_s23 = sshll.u32 %s388_s22, 4  ;;  %s31_s23 = int_to_ptr.vmem [resolvable:$true] %s30_s23 }
   0x8   :  { %36 = dma.hbm_to_vmem [thread:$0]  %s29_s19, 2048, %s31_s23, [#allocation6], %s386_s20, %s386_s20, %s387_s21  }
   0x9   :  { %379 = dma.done.wait [#allocation3], 256  }
   0xa   :  { %380 = vsyncadd [#allocation3], 4294967040 }
   0xb   :  { %381 = dma.done.wait [#allocation6], 2048  }
   0xc   :  { %382 = vsyncadd [#allocation6], 4294965248  ;;  %v278_v0 = vld [vmem:[#allocation5 + $0x70] sm:$0xf]  ;;  %v299_v1 = vld [vmem:[#allocation5 + $0x74] sm:$0xf0] }
   0xd   :  { %v298_v2 = vld [vmem:[#allocation5 + $0x74] sm:$0xf]  ;;  %v279_v3 = vor.u32 %v299_v1, %v278_v0  ;;  %v280_v4 = vld [vmem:[#allocation5 + $0x78] sm:$0xf0]  ;;  %v270_v5 = vld [vmem:[#allocation5 + $0x60] sm:$0xf] }
   0xe   :  { %v297_v6 = vld [vmem:[#allocation5 + $0x64] sm:$0xf0]  ;;  %v283_v7 = vor.u32 %v298_v2, %v280_v4  ;;  %v296_v8 = vld [vmem:[#allocation5 + $0x64] sm:$0xf]  ;;  %v272_v9 = vld [vmem:[#allocation5 + $0x68] sm:$0xf0] }
   0xf   :  { %164 = vmatpush.bf16.msra.mxu0 %v279_v3  ;;  %v271_v10 = vor.u32 %v297_v6, %v270_v5  ;;  %v275_v11 = vor.u32 %v296_v8, %v272_v9  ;;  %v262_v12 = vld [vmem:[#allocation5 + $0x50] sm:$0xf]  ;;  %v295_v13 = vld [vmem:[#allocation5 + $0x54] sm:$0xf0]  ;;  %v294_v14 = vld [vmem:[#allocation5 + $0x54] sm:$0xf] }
  0x10   :  { %178 = vmatpush.bf16.msra.mxu1 %v283_v7  ;;  %v264_v15 = vld [vmem:[#allocation5 + $0x58] sm:$0xf0]  ;;  %v263_v16 = vor.u32 %v295_v13, %v262_v12  ;;  %v254_v18 = vld [vmem:[#allocation5 + $0x40] sm:$0xf]  ;;  %v293_v19 = vld [vmem:[#allocation5 + $0x44] sm:$0xf0] }
  0x11   :  { %v267_v17 = vor.u32 %v294_v14, %v264_v15  ;;  %v292_v20 = vld [vmem:[#allocation5 + $0x44] sm:$0xf]  ;;  %v256_v21 = vld [vmem:[#allocation5 + $0x48] sm:$0xf0]  ;;  %v255_v22 = vor.u32 %v293_v19, %v254_v18  ;;  %v246_v24 = vld [vmem:[#allocation5 + $0x30] sm:$0xf] }
  0x12   :  { %v259_v23 = vor.u32 %v292_v20, %v256_v21  ;;  %v291_v25 = vld [vmem:[#allocation5 + $0x34] sm:$0xf0]  ;;  %v290_v26 = vld [vmem:[#allocation5 + $0x34] sm:$0xf]  ;;  %v248_v27 = vld [vmem:[#allocation5 + $0x38] sm:$0xf0] }
  0x13   :  { %165 = vmatpush.bf16.msra.mxu0 %v271_v10  ;;  %v247_v28 = vor.u32 %v291_v25, %v246_v24  ;;  %v251_v29 = vor.u32 %v290_v26, %v248_v27  ;;  %v238_v30 = vld [vmem:[#allocation5 + $0x20] sm:$0xf]  ;;  %v289_v31 = vld [vmem:[#allocation5 + $0x24] sm:$0xf0]  ;;  %v288_v32 = vld [vmem:[#allocation5 + $0x24] sm:$0xf] }
  0x14   :  { %179 = vmatpush.bf16.msra.mxu1 %v275_v11  ;;  %v240_v33 = vld [vmem:[#allocation5 + $0x28] sm:$0xf0]  ;;  %v239_v34 = vor.u32 %v289_v31, %v238_v30  ;;  %v230_v36 = vld [vmem:[#allocation5 + $0x10] sm:$0xf]  ;;  %v287_v37 = vld [vmem:[#allocation5 + $0x14] sm:$0xf0] }
  0x15   :  { %v243_v35 = vor.u32 %v288_v32, %v240_v33  ;;  %v286_v38 = vld [vmem:[#allocation5 + $0x14] sm:$0xf]  ;;  %v232_v39 = vld [vmem:[#allocation5 + $0x18] sm:$0xf0]  ;;  %v231_v40 = vor.u32 %v287_v37, %v230_v36  ;;  %v222_v42 = vld [vmem:[#allocation5] sm:$0xf] }
  0x16   :  { %v235_v41 = vor.u32 %v286_v38, %v232_v39  ;;  %v285_v43 = vld [vmem:[#allocation5 + $0x4] sm:$0xf0]  ;;  %v284_v44 = vld [vmem:[#allocation5 + $0x4] sm:$0xf]  ;;  %v224_v45 = vld [vmem:[#allocation5 + $0x8] sm:$0xf0] }
  0x17   :  { %166 = vmatpush.bf16.msra.mxu0 %v263_v16  ;;  %v223_v46 = vor.u32 %v285_v43, %v222_v42  ;;  %v65_v47 = vld [vmem:[#allocation2] sm:$0xff]  ;;  %v66_v48 = vld [vmem:[#allocation2 + $0x8] sm:$0xff]  ;;  %v227_v49 = vor.u32 %v284_v44, %v224_v45  ;;  %s389_s24 = smov [#allocation7]   ;;  %s206_s28 = sshll.u32 %s427_s3, 4  ;;  %s207_s28 = int_to_ptr.hbm [resolvable:$true] %s206_s28 }
  0x18   :  { %180 = vmatpush.bf16.msra.mxu1 %v267_v17  ;;  %v67_v50 = vpack.c.bf16 %v66_v48, %v65_v47  ;;  %v51_v51 = vld [vmem:[%s426_s2] sm:$0x3]  ;;  %s204_s25 = sshll.u32 %s389_s24, 4  ;;  %s390_s2 = smov 256   ;;  %s205_s25 = int_to_ptr.vmem [resolvable:$true] %s204_s25 }
  0x19   :  { %v53_v52 = vperm.slane %v51_v51, 0  ;;  %v54_v53 = vperm.slane %v51_v51, 1  ;;  %s391_s29 = smov 16  }
  0x1b   :  { %167 = vmatpush.bf16.msra.mxu0 %v255_v22 }
  0x1c   :  { %181 = vmatpush.bf16.msra.mxu1 %v259_v23 }
  0x1f   :  { %168 = vmatpush.bf16.msra.mxu0 %v247_v28 }
  0x20   :  { %182 = vmatpush.bf16.msra.mxu1 %v251_v29 }
  0x23   :  { %169 = vmatpush.bf16.msra.mxu0 %v239_v34 }
  0x24   :  { %183 = vmatpush.bf16.msra.mxu1 %v243_v35 }
  0x27   :  { %170 = vmatpush.bf16.msra.mxu0 %v231_v40 }
  0x28   :  { %184 = vmatpush.bf16.msra.mxu1 %v235_v41 }
  0x2b   :  { %171 = vmatpush.bf16.msra.mxu0 %v223_v46 }
  0x2c   :  { %185 = vmatpush.bf16.msra.mxu1 %v227_v49 }
  0x2e   :  { %172 = vmatmul.bf16.vlgmr.msra.gmra.mxu0 %v67_v50 }
  0x2f   :  { %186 = vmatmul.bf16.vlgmr.msra.gmra.mxu1 %v67_v50 }
  0xab   :  { %v173_v54 = vpop.f32.mrf.mxu0 }
  0xac   :  { %v192_v55 = vadd.f32 %v173_v54, %v53_v52  ;;  %v187_v56 = vpop.f32.mrf.mxu1 }
  0xad   :  { %v193_v57 = vadd.f32 %v187_v56, %v54_v53 }
  0xae   :  { %196 = vst [vmem:[#allocation7] sm:$0xff] %v192_v55 }
  0xaf   :  { %197 = vst [vmem:[#allocation7 + $0x8] sm:$0xff] %v193_v57 }
  0xb3   :  { %v175_v58 = vpop.f32.mrf.mxu0 }
  0xb4   :  { %v194_v59 = vadd.f32 %v175_v58, %v53_v52  ;;  %v189_v60 = vpop.f32.mrf.mxu1 }
  0xb5   :  { %v195_v61 = vadd.f32 %v189_v60, %v54_v53 }
  0xb6   :  { %198 = vst [vmem:[#allocation7 + $0x10] sm:$0xff] %v194_v59 }
  0xb7   :  { %199 = vst [vmem:[#allocation7 + $0x18] sm:$0xff] %v195_v61 }
  0xb8   :  { %212 = dma.vmem_to_hbm [thread:$0]  %s205_s25, 512, %s207_s28, [#allocation4], %s390_s2, %s390_s2, %s391_s29  }
  0xb9   :  { %383 = dma.done.wait [#allocation4], 512  }
  0xba   :  { %384 = vsyncadd [#allocation4], 4294966784 }
  0xbb   :  { %217 = vsyncpa [#allocation3], 1 }
  0xbc   :  { %218 = vsyncpa [#allocation6], 1 }
  0xbd   :  { %219 = vsyncpa [#allocation4], 1 }

</bundles_post_ra>
